<compile_context>
chip_gen: v7x
topology: tpu7x:2x2x1
jax: 0.10.0
libtpu: 0.0.40
codegen_flags: <defaults>
</compile_context>

<pallas_src>
import jax
import jax.numpy as jnp
from jax.experimental import pallas as pl
from jax.experimental.pallas import tpu as pltpu


def _snakebeta_kernel(x_ref, two_a_ref, half_ib_ref, o_ref):
    # x_ref/o_ref: (TR, TT) in the input dtype; params: (TR, 1) float32.
    x = x_ref[...].astype(jnp.float32)
    two_a = two_a_ref[...]        # 2 * alpha_eff          (per row)
    half_ib = half_ib_ref[...]    # 0.5 / (beta_eff + eps) (per row)
    # x + 1/(b+eps)*sin^2(a x)  ==  (x + hb) - hb*cos(2a x)
    y = (x + half_ib) - half_ib * jnp.cos(x * two_a)
    o_ref[...] = y.astype(o_ref.dtype)


def _select_tiles(R, T, itemsize, max_block_bytes, max_rows_per_block):
    """Byte-budgeted, lane-dense tiles obeying the (8,128)-or-full-dim rule."""
    sub = 8 * max(1, 4 // itemsize)                  # f32 -> 8, bf16 -> 16
    budget_elems = max(sub * 128, max_block_bytes // itemsize)

    # Lane (last) axis: take the whole row if it fits the budget (full-dim
    # blocks are always legal, any length); otherwise a 128-multiple tile and
    # let Pallas handle the ragged tail block.
    tt_limit = max(128, ((budget_elems // sub) // 128) * 128)
    TT = T if T <= tt_limit else tt_limit

    # Row (sublane) axis: fill the remaining budget, multiple of `sub`, capped
    # so the lane-padded (TR,1) parameter buffers stay small in VMEM.
    tr = budget_elems // max(TT, 1)
    tr = max(sub, (tr // sub) * sub)
    tr = min(tr, max_rows_per_block)
    TR = R if tr >= R else tr
    return TR, TT


def snake_beta(x, alpha, beta, *, alpha_logscale=False, no_div_by_zero=1e-9,
               max_block_bytes=2 * 1024 * 1024, max_rows_per_block=1024):
    """SnakeBeta(x) = x + 1/(beta + eps) * sin^2(alpha * x), per channel.

    x:     (B, C, T)
    alpha: (C,)
    beta:  (C,)
    """
    B, C, T = x.shape
    R = B * C

    # ---- parameter transforms hoisted out of the kernel (always f32) ----
    a_eff = alpha.astype(jnp.float32)
    b_eff = beta.astype(jnp.float32)
    if alpha_logscale:
        a_eff = jnp.exp(a_eff)
        b_eff = jnp.exp(b_eff)
    two_a = 2.0 * a_eff
    half_ib = 0.5 / (b_eff + jnp.float32(no_div_by_zero))

    # Expand per-channel params to per-row (B*C) — tiny compared to x.
    two_a_r = jnp.tile(two_a, (B,)).reshape(R, 1)
    half_ib_r = jnp.tile(half_ib, (B,)).reshape(R, 1)

    # Free, contiguous reshape: the pallas_call is the only pass over x.
    x2 = x.reshape(R, T)

    itemsize = jnp.dtype(x.dtype).itemsize
    TR, TT = _select_tiles(R, T, itemsize, max_block_bytes, max_rows_per_block)

    grid = (pl.cdiv(R, TR), pl.cdiv(T, TT))  # t fastest -> params not re-DMA'd

    out = pl.pallas_call(
        _snakebeta_kernel,
        out_shape=jax.ShapeDtypeStruct((R, T), x.dtype),
        grid_spec=pltpu.PrefetchScalarGridSpec(
            num_scalar_prefetch=0,
            grid=grid,
            in_specs=[
                pl.BlockSpec((TR, TT), lambda r, t: (r, t)),
                pl.BlockSpec((TR, 1), lambda r, t: (r, 0)),
                pl.BlockSpec((TR, 1), lambda r, t: (r, 0)),
            ],
            out_specs=pl.BlockSpec((TR, TT), lambda r, t: (r, t)),
        ),
        compiler_params=pltpu.CompilerParams(
            dimension_semantics=("parallel", "parallel"),
        ),
    )(x2, two_a_r, half_ib_r)

    return out.reshape(B, C, T)


def _snakebeta_reference(x, alpha, beta, *, alpha_logscale=False, eps=1e-9):
    """Pure-JAX reference matching the PyTorch forward (sin^2 form)."""
    a = alpha[None, :, None].astype(jnp.float32)
    b = beta[None, :, None].astype(jnp.float32)
    if alpha_logscale:
        a = jnp.exp(a)
        b = jnp.exp(b)
    xf = x.astype(jnp.float32)
    y = xf + 1.0 / (b + eps) * jnp.sin(xf * a) ** 2
    return y.astype(x.dtype)


if __name__ == "__main__":
    key = jax.random.PRNGKey(0)
    kx, ka, kb = jax.random.split(key, 3)

    fn = jax.jit(snake_beta,
                 static_argnames=("alpha_logscale", "max_block_bytes"))

    # --- primary small test: (B, C, T) = (2, 4, 16), default SnakeBeta init ---
    B, C, T = 2, 4, 16
    x = jax.random.normal(kx, (B, C, T), dtype=jnp.float32)
    alpha = jnp.ones((C,), jnp.float32)   # init with alpha_logscale=False
    beta = jnp.ones((C,), jnp.float32)
    out = jax.block_until_ready(fn(x, alpha, beta, alpha_logscale=False))
    ref = _snakebeta_reference(x, alpha, beta, alpha_logscale=False)
    assert out.shape == ref.shape, "shape mismatch vs reference"
    assert jnp.allclose(out, ref, atol=1e-5, rtol=1e-5), "mismatch (basic)"

    # --- ragged-edge test: tiny block budget forces partial tail blocks on
    #     both axes (R = 3*5 = 15 rows with TR=8, T=300 with TT=128) ---
    B2, C2, T2 = 3, 5, 300
    x2 = jax.random.normal(ka, (B2, C2, T2), dtype=jnp.float32)
    alpha2 = jax.random.uniform(kb, (C2,), jnp.float32, 0.5, 1.5)
    beta2 = jax.random.uniform(ka, (C2,), jnp.float32, 0.5, 1.5)
    out2 = jax.block_until_ready(
        fn(x2, alpha2, beta2, alpha_logscale=False, max_block_bytes=4096))
    ref2 = _snakebeta_reference(x2, alpha2, beta2, alpha_logscale=False)
    assert jnp.allclose(out2, ref2, atol=1e-5, rtol=1e-5), "mismatch (ragged)"

    # --- alpha_logscale=True path (exp of params hoisted in the wrapper) ---
    alpha3 = 0.1 * jax.random.normal(kb, (C2,), jnp.float32)
    beta3 = 0.1 * jax.random.normal(ka, (C2,), jnp.float32)
    out3 = jax.block_until_ready(fn(x2, alpha3, beta3, alpha_logscale=True))
    ref3 = _snakebeta_reference(x2, alpha3, beta3, alpha_logscale=True)
    assert jnp.allclose(out3, ref3, atol=1e-5, rtol=1e-5), "mismatch (logscale)"

    print("KERNEL_OK")
</pallas_src>

<mosaic_0001>
module attributes {stable_mosaic.version = 11 : i64} {
  func.func @_snakebeta_kernel(%arg0: i32, %arg1: i32, %arg2: memref<8x16xf32, #tpu.memory_space<vmem>>, %arg3: memref<8x1xf32, #tpu.memory_space<vmem>>, %arg4: memref<8x1xf32, #tpu.memory_space<vmem>>, %arg5: memref<8x16xf32, #tpu.memory_space<vmem>>) attributes {dimension_semantics = [#tpu.dimension_semantics<parallel>, #tpu.dimension_semantics<parallel>], iteration_bounds = array<i64: 1, 1>, scalar_prefetch = 0 : i64, scratch_operands = 0 : i64, tpu.core_type = #tpu.core_type<tc>, window_params = [{transform_indices = @transform_0, window_bounds = array<i64: 8, 16>}, {transform_indices = @transform_1, window_bounds = array<i64: 8, 1>}, {transform_indices = @transform_2, window_bounds = array<i64: 8, 1>}, {transform_indices = @transform_3, window_bounds = array<i64: 8, 16>}]} {
    %c0 = arith.constant 0 : index
    %c0_0 = arith.constant 0 : index
    %0 = vector.load %arg2[%c0, %c0_0] : memref<8x16xf32, #tpu.memory_space<vmem>>, vector<8x16xf32>
    %c0_1 = arith.constant 0 : index
    %c0_2 = arith.constant 0 : index
    %1 = vector.load %arg3[%c0_1, %c0_2] : memref<8x1xf32, #tpu.memory_space<vmem>>, vector<8x1xf32>
    %c0_3 = arith.constant 0 : index
    %c0_4 = arith.constant 0 : index
    %2 = vector.load %arg4[%c0_3, %c0_4] : memref<8x1xf32, #tpu.memory_space<vmem>>, vector<8x1xf32>
    %3 = vector.broadcast %2 : vector<8x1xf32> to vector<8x16xf32>
    %4 = arith.addf %0, %3 : vector<8x16xf32>
    %5 = vector.broadcast %1 : vector<8x1xf32> to vector<8x16xf32>
    %6 = arith.mulf %0, %5 : vector<8x16xf32>
    %7 = math.cos %6 : vector<8x16xf32>
    %8 = vector.broadcast %2 : vector<8x1xf32> to vector<8x16xf32>
    %9 = arith.mulf %8, %7 : vector<8x16xf32>
    %10 = arith.subf %4, %9 : vector<8x16xf32>
    %c0_5 = arith.constant 0 : index
    %c0_6 = arith.constant 0 : index
    %11 = vector.load %arg5[%c0_5, %c0_6] : memref<8x16xf32, #tpu.memory_space<vmem>>, vector<8x16xf32>
    tpu.vector_store %arg5[%c0_5, %c0_6], %10 {strides = array<i32>} : memref<8x16xf32, #tpu.memory_space<vmem>>, vector<8x16xf32>,
    return
  }
  func.func @transform_0(%arg0: i32, %arg1: i32) -> (i32, i32) {
    %c0_i32 = arith.constant 0 : i32
    return %arg0, %arg1 : i32, i32
  }
  func.func @transform_1(%arg0: i32, %arg1: i32) -> (i32, i32) {
    %c0_i32 = arith.constant 0 : i32
    %c0_i32_0 = arith.constant 0 : i32
    return %arg0, %c0_i32 : i32, i32
  }
  func.func @transform_2(%arg0: i32, %arg1: i32) -> (i32, i32) {
    %c0_i32 = arith.constant 0 : i32
    %c0_i32_0 = arith.constant 0 : i32
    return %arg0, %c0_i32 : i32, i32
  }
  func.func @transform_3(%arg0: i32, %arg1: i32) -> (i32, i32) {
    %c0_i32 = arith.constant 0 : i32
    return %arg0, %arg1 : i32, i32
  }
}

</mosaic_0001>

<bundles_post_ra>
// kernel: tile.13
= control target key start
LH: loop header
LB: loop body
LE: loop exit
PB: predicated region body
PF: predicated region fallthrough
CT: control target
= control target key end

     0   :  { %s22_s0 = inlined_call_operand.vmem [shape: f32[4], index: 0, kind: input, shape index: {}]   ;;  %s23_s1 = inlined_call_operand.vmem [shape: f32[2,4], index: 1, kind: output, shape index: {}]  }
   0x1   :  { %v4_v0 = vld [vmem:[%s22_s0] ss:$0 sm:$0xff] }
   0x2   :  { %5 = vst [vmem:[%s23_s1] sm:$0x3] %v4_v0 }

// kernel: tile.1
= control target key start
LH: loop header
LB: loop body
LE: loop exit
PB: predicated region body
PF: predicated region fallthrough
CT: control target
= control target key end

     0   :  { %s34_s8 = smov 125   ;;  %vm7_vm0 = vcmask 7168   ;;  %s35_s11 = smov 126   ;;  %s61_s0 = inlined_call_operand.vmem [shape: f32[2,4], index: 0, kind: input, shape index: {}]   ;;  %s62_s1 = inlined_call_operand.vmem [shape: f32[8,1], index: 1, kind: output, shape index: {}]  }
   0x1   :  { %v4_v0 = vld [vmem:[%s61_s0] sm:$0x3]  ;;  %s33_s0 = smov 127  }
   0x2   :  { %5 = vst [vmem:[#allocation0] sm:$0x3] %v4_v0 }
   0x9   :  { %v9_v1 = vld [vmem:[#allocation0] sm:$0x3]  }
   0xa   :  { %v21_v2 = vld [vmem:[#allocation0] sm:$0x3]   ;;  %10 = vrot.lane.b32.xlu0 %v9_v1, %s33_s0 }
   0xb   :  { %22 = vrot.lane.b32.xlu1 %v21_v2, %s34_s8  ;;  %v6_v3 = vld [vmem:[#allocation0] sm:$0x3]  }
   0xc   :  { %v15_v4 = vld [vmem:[#allocation0] sm:$0x3]   ;;  %8 = vst.msk [vmem:[%s62_s1] ss:$4 sm:$0x3] %vm7_vm0, %v6_v3  }
   0xe   :  { %16 = vrot.lane.b32.xlu0 %v15_v4, %s35_s11 }
  0x7c   :  { %v11_v5 = vpop.permute.xlu0 %10  }
  0x7d   :  { %v23_v6 = vpop.permute.xlu1 %22   ;;  %27 = vst.msk [vmem:[%s62_s1 + $0x1] ss:$4 sm:$0x3] %vm7_vm0, %v11_v5  }
  0x7e   :  { %29 = vst.msk [vmem:[%s62_s1 + $0x3] ss:$4 sm:$0x3] %vm7_vm0, %v23_v6  }
  0x80   :  { %v17_v7 = vpop.permute.xlu0 %16  }
  0x81   :  { %28 = vst.msk [vmem:[%s62_s1 + $0x2] ss:$4 sm:$0x3] %vm7_vm0, %v17_v7  }

// kernel: snake_beta.1
= control target key start
LH: loop header
LB: loop body
LE: loop exit
PB: predicated region body
PF: predicated region fallthrough
CT: control target
= control target key end

     0   :  { %v196_v1 = vmov 0   ;;  %s270_s0 = inlined_call_operand.vmem [shape: f32[8,16], index: 0, kind: input, shape index: {}]   ;;  %s271_s1 = inlined_call_operand.vmem [shape: f32[8,1], index: 1, kind: input, shape index: {}]   ;;  %s272_s2 = inlined_call_operand.vmem [shape: f32[8,1], index: 2, kind: input, shape index: {}]   ;;  %s273_s3 = inlined_call_operand.hbm [shape: f32[8,16], index: 3, kind: output, shape index: {}]  }
   0x1   :  { %v16_v0 = vld [vmem:[%s271_s1] sm:$0xff]  ;;  %167 = vset.pattern.permute.xlu0 %v196_v1 }
   0x2   :  { %26 = vperm.xlu0 %167, %v16_v0  }
   0x3   :  { %8 = vsyncpa [#allocation3], 0  ;;  %v17_v2 = vld [vmem:[%s272_s2] sm:$0xff]  ;;  %v197_v17 = vmov 2102212464   ;;  %vm135_vm13 = vcmask 130048  }
   0x4   :  { %v233_v3 = vld [vmem:[%s270_s0] sm:$0xff]  ;;  %v198_v19 = vmov 920167782   ;;  %v199_v23 = vmov 1326507024   ;;  %s203_s0 = smov [#allocation2]  }
   0x5   :  { %v200_v25 = vmov 683565275   ;;  %v201_v27 = vmov 2475754826   ;;  %v202_v30 = vmov 2131351028  }
   0x6   :  { %20 = vperm.xlu0 %167, %v17_v2   ;;  %s143_s1 = sshll.u32 %s203_s0, 4  ;;  %s144_s1 = int_to_ptr.vmem [resolvable:$true] %s143_s1 }
   0x7   :  { %s172_s2 = scalar_lea.vmem %s144_s1, 128  ;;  %p177_p1 = scmp.lt.s32.totalorder %s144_s1, %s144_s1 }
   0x8   :  { %p173_p0 = scmp.ne.s32.totalorder %s144_s1, %s172_s2  ;;  %p178_p2 = scmp.lt.s32.totalorder %s172_s2, %s172_s2 }
   0xa   :  { %p179_p3 = por %p178_p2, %p177_p1 }
   0xc   :  { %p180_p4 = pnand %p179_p3, %p173_p0 }
  0x81   :  { %v27_v4 = vpop.permute.xlu0 %26 }
  0x82   :  { %v236_v5 = vmul.f32 %v27_v4, %v233_v3 }
  0x84   :  { %v33_v6 = vand.u32 2139095040, %v236_v5  ;;  %v30_v7 = vand.u32 2147483647, %v236_v5  ;;  %vm32_vm7 = vcmp.lt.s32.totalorder %v236_v5, 0  ;;  %vm122_vm12 = vweird.f32 %v236_v5 }
  0x86   :  { %v34_v8 = vshrl.u32 %v33_v6, 23  ;;  %v37_v10 = vand.u32 8388607, %v30_v7  ;;  %vm31_vm8 = vcmp.le.f32.partialorder %v30_v7, 0.7853982 }
  0x88   :  { %v151_v9 = vadd.s32 4294967169, %v34_v8  ;;  %v38_v13 = vor.u32 8388608, %v37_v10 }
  0x8a   :  { %v40_v11 = vadd.s32 1, %v151_v9  ;;  %v78_v21 = vshll.u32 %v38_v13, 8 }
  0x8c   :  { %vm41_vm0 = vcmp.gt.s32.totalorder %v40_v11, 0 }
  0x8d   :  { %v42_v12 = vsel %vm41_vm0, %v40_v11, 0 }
  0x8e   :  { %v44_v14 = vand.u32 31, %v42_v12  ;;  %v43_v15 = vshrl.u32 %v42_v12, 5 }
  0x90   :  { %v45_v16 = vsub.s32 32, %v44_v14  ;;  %v56_v18 = vshll.u32 %v197_v17, %v44_v14  ;;  %v59_v20 = vshll.u32 %v198_v19, %v44_v14  ;;  %v47_v26 = vshll.u32 %v200_v25, %v44_v14 }
  0x91   :  { %v50_v29 = vshll.u32 %v201_v27, %v44_v14  ;;  %v53_v32 = vshll.u32 %v202_v30, %v44_v14  ;;  %vm65_vm1 = vcmp.lt.s32.totalorder %v43_v15, 4  ;;  %vm62_vm2 = vcmp.lt.s32.totalorder %v43_v15, 1 }
  0x92   :  { %v57_v22 = vshrl.u32 %v198_v19, %v45_v16  ;;  %v60_v24 = vshrl.u32 %v199_v23, %v45_v16  ;;  %v48_v28 = vshrl.u32 %v201_v27, %v45_v16  ;;  %v51_v31 = vshrl.u32 %v202_v30, %v45_v16 }
  0x93   :  { %v54_v33 = vshrl.u32 %v197_v17, %v45_v16  ;;  %v46_v37 = vshrl.u32 %v200_v25, %v45_v16  ;;  %vm63_vm3 = vcmp.lt.s32.totalorder %v43_v15, 2  ;;  %vm64_vm4 = vcmp.lt.s32.totalorder %v43_v15, 3 }
  0x94   :  { %v58_v34 = vor.u32 %v57_v22, %v56_v18  ;;  %v61_v35 = vor.u32 %v60_v24, %v59_v20  ;;  %v49_v36 = vor.u32 %v48_v28, %v47_v26  ;;  %v52_v38 = vor.u32 %v51_v31, %v50_v29 }
  0x95   :  { %v55_v39 = vor.u32 %v54_v33, %v53_v32  ;;  %v21_v32 = vpop.permute.xlu0 %20 }
  0x96   :  { %v71_v40 = vsel %vm65_vm1, %v58_v34, 920167782  ;;  %v75_v41 = vsel %vm65_vm1, %v61_v35, 1326507024  ;;  %v70_v43 = vsel %vm62_vm2, %v49_v36, %v52_v38  ;;  %v66_v46 = vsel %vm62_vm2, %v46_v37, %v49_v36 }
  0x97   :  { %v67_v42 = vsel %vm65_vm1, %v55_v39, 2102212464  ;;  %v72_v44 = vsel %vm64_vm4, %v55_v39, %v71_v40  ;;  %v74_v45 = vsel %vm62_vm2, %v52_v38, %v55_v39  ;;  %v76_v49 = vsel %vm64_vm4, %v58_v34, %v75_v41 }
  0x98   :  { %v68_v47 = vsel %vm64_vm4, %v52_v38, %v67_v42  ;;  %v73_v48 = vsel %vm63_vm3, %v70_v43, %v72_v44  ;;  %v77_v50 = vsel %vm63_vm3, %v74_v45, %v76_v49  ;;  %v23_v35 = vadd.f32 %v21_v32, %v233_v3 }
  0x99   :  { %v242_v51 = vmul.u32.u64.low %v78_v21, %v73_v48  ;;  %v243_v52 = vmul.u32.u64.high %v78_v21, %v73_v48, %v242_v51  ;;  %v245_v53 = vmul.u32.u64.low %v78_v21, %v77_v50  ;;  %v246_v54 = vmul.u32.u64.high %v78_v21, %v77_v50, %v245_v53 }
  0x9a   :  { %v69_v55 = vsel %vm63_vm3, %v66_v46, %v68_v47 }
  0x9b   :  { %v88_v56 = vadd.s32 1, %v243_v52  ;;  %v85_v57 = vmul.u32 %v78_v21, %v69_v55  ;;  %vm87_vm5 = vc.u32 %v246_v54, %v242_v51  ;;  %v86_v8 = vadd.s32 %v242_v51, %v246_v54 }
  0x9d   :  { %v89_v58 = vsel %vm87_vm5, %v88_v56, %v243_v52 }
  0x9e   :  { %v90_v59 = vadd.s32 %v89_v58, %v85_v57 }
  0xa0   :  { %v91_v60 = vadd.s32 536870912, %v90_v59 }
  0xa2   :  { %v92_v61 = vshrl.u32 %v91_v60, 30 }
  0xa4   :  { %v93_v62 = vshll.u32 %v92_v61, 30  ;;  %v116_v22 = vsub.s32 4, %v92_v61 }
  0xa6   :  { %v94_v63 = vsub.s32 %v90_v59, %v93_v62  ;;  %v117_v24 = vsel %vm32_vm7, %v116_v22, %v92_v61 }
  0xa7   :  { %v119_v25 = vsel %vm31_vm8, 0, %v117_v24 }
  0xa8   :  { %v96_v0 = vsub.s32 0, %v94_v63  ;;  %v123_v26 = vand.u32 3, %v119_v25 }
  0xaa   :  { %v152_v1 = vmin.u32 %v96_v0, %v94_v63  ;;  %vm128_vm9 = vcmp.eq.s32.totalorder %v123_v26, 2  ;;  %vm125_vm10 = vcmp.eq.s32.totalorder %v123_v26, 0  ;;  %vm124_vm11 = vcmp.lt.s32.totalorder %v123_v26, 2 }
  0xac   :  { %v98_v2 = vclz %v152_v1 }
  0xae   :  { %v153_v4 = vadd.s32 4294967294, %v98_v2 }
  0xb0   :  { %vm154_vm6 = vcmp.lt.s32.totalorder %v153_v4, 0 }
  0xb1   :  { %v101_v6 = vsel %vm154_vm6, 0, %v153_v4 }
  0xb2   :  { %v102_v9 = vsub.s32 32, %v101_v6  ;;  %v106_v10 = vsub.s32 4294967266, %v101_v6  ;;  %v103_v11 = vshll.u32 %v94_v63, %v101_v6 }
  0xb4   :  { %v104_v12 = vshrl.u32 %v86_v8, %v102_v9  ;;  %v107_v13 = vadd.s32 127, %v106_v10 }
  0xb6   :  { %v105_v14 = vor.u32 %v104_v12, %v103_v11  ;;  %v108_v15 = vshll.u32 %v107_v13, 23 }
  0xb8   :  { %v109_v16 = vor.u32 4788187, %v108_v15  ;;  %v112_v18 = vcvt.s32.f32 %v105_v14 }
  0xba   :  { %v110_v17 = vand.u32 2147483647, %v109_v16 }
  0xbc   :  { %v113_v19 = vmul.f32 %v112_v18, %v110_v17 }
  0xbe   :  { %v114_v20 = vxor.u32 2147483648, %v113_v19 }
  0xc0   :  { %v115_v21 = vsel %vm32_vm7, %v114_v20, %v113_v19 }
  0xc1   :  { %v118_v23 = vsel %vm31_vm8, %v236_v5, %v115_v21 }
  0xc2   :  { %168 = vcosq.f32 %v118_v23 }
  0xc3   :  { %170 = vsinq.f32 %v118_v23 }
  0xcc   :  { %v169_v27 = vpop.eup %168 }
  0xcd   :  { %v171_v28 = vpop.eup %170  ;;  %v129_v29 = vxor.u32 2147483648, %v169_v27 }
  0xce   :  { %v126_v30 = vxor.u32 2147483648, %v171_v28 }
  0xcf   :  { %v130_v31 = vsel %vm128_vm9, %v129_v29, %v171_v28 }
  0xd0   :  { %v127_v33 = vsel %vm125_vm10, %v169_v27, %v126_v30 }
  0xd1   :  { %v131_v7 = vsel %vm124_vm11, %v127_v33, %v130_v31 }
  0xd2   :  { %v132_v34 = vsel %vm122_vm12, nan, %v131_v7 }
  0xd3   :  { %v133_v36 = vmul.f32 %v132_v34, %v21_v32 }
  0xd5   :  { %v134_v37 = vsub.f32 %v23_v35, %v133_v36 }
  0xd7   :  { %136 = vst.msk [vmem:[#allocation2] sm:$0xff] %vm135_vm13, %v134_v37 }
  0xd8   :  { %183 = shalt.err (!%p180_p4)
}
  0xd9   :  { %s184_s20 = scalar_lea.hbm %s273_s3, 128 }
  0xda   :  { %p185_p5 = scmp.ne.s32.totalorder %s273_s3, %s184_s20  ;;  %p188_p6 = scmp.lt.u32.totalorder %s184_s20, %s273_s3 }
  0xdc   :  { %p190_p7 = pnand %p188_p6, %p185_p5 }
  0xde   :  { %193 = shalt.err (!%p190_p7)
}
  0xdf   :  { %146 = dma.vmem_to_hbm [thread:$0]  %s144_s1, 128, %s273_s3, [#allocation3]  }
  0xe0   :  { %194 = dma.done.wait [#allocation3], 128  }
  0xe1   :  { %195 = vsyncadd [#allocation3], 4294967168 }
  0xe2   :  { %150 = vsyncpa [#allocation3], 1 }

</bundles_post_ra>
